<compile_context>
chip_gen: v5e
topology: v5e:2x2
jax: 0.10.0
libtpu: 0.0.40
codegen_flags: <defaults>
</compile_context>

<pallas_src>
import functools

import jax
import jax.numpy as jnp
from jax import lax
from jax.experimental import pallas as pl
from jax.experimental.pallas import tpu as pltpu

_LANES = 128
_SUBLANES = 8


# ------------------------------ tiling helpers ---------------------------------
def _pick_row_tile(hwb, bytes_per_row, target_bytes, max_rows=8192):
    """Pick a sublane-row tile over the (H*W)/128 axis.

    Returns (ts, num_tiles).  ts is a multiple of 8 (grouped vreg-resident path) or
    the full extent when the extent is small.  Prefers a ts that divides hwb exactly
    so the in-kernel row-validity mask can be dropped at compile time.
    """
    ts = target_bytes // max(1, bytes_per_row)
    ts = max(_SUBLANES, min(int(ts), max_rows))
    ts -= ts % _SUBLANES
    if ts >= hwb:
        if hwb % _SUBLANES == 0 or hwb <= 4 * _SUBLANES:
            return hwb, 1                       # single full-extent block
        # hwb > 32 but not a multiple of 8: keep ts a multiple of 8 so the grouped
        # (vreg-resident) path handles the bulk; the short tail is row-masked.
        ts = int(pl.cdiv(hwb, 2 * _SUBLANES)) * _SUBLANES
        return ts, int(pl.cdiv(hwb, ts))
    # prefer a slightly smaller ts that divides hwb exactly (drops the row mask)
    lo = max(_SUBLANES, (ts * 3 // 4) // _SUBLANES * _SUBLANES)
    for cand in range(ts, lo - 1, -_SUBLANES):
        if hwb % cand == 0:
            return cand, hwb // cand
    return ts, int(pl.cdiv(hwb, ts))


def _pick_spatial_chunks(n, num_tiles):
    """Split the spatial-tile axis into two 'parallel' chunks when the batch axis
    alone cannot keep both v7x TensorCores busy (no-op on 1-TC chips)."""
    if n == 1 and num_tiles >= 2 and num_tiles % 2 == 0:
        return 2
    return 1


def _vmem_limit(step_bytes):
    # double-buffered inputs + outputs + compiler scratch; clamp to a budget that is
    # safe on v5e/v6e (128 MiB physical) and v7x (64 MiB physical, 32 MiB default scoped).
    return int(min(48 << 20, max(32 << 20, 3 * step_bytes)))


# ----------------------------- semantic CE kernel ------------------------------
def _semantic_ce_kernel(logits_ref, labels_ref, sum_ref, cnt_ref, *,
                        num_classes, ts, hwb, ignore_index,
                        tiles_per_chunk, need_row_mask, unroll_classes):
    s = pl.program_id(1)
    i = pl.program_id(2)

    @pl.when(i == 0)
    def _init():
        sum_ref[...] = jnp.zeros_like(sum_ref)
        cnt_ref[...] = jnp.zeros_like(cnt_ref)

    base_row = (s * tiles_per_chunk + i) * ts

    def class_reduce(load, labels):
        """Numerically-stable per-pixel logsumexp + picked logit, class axis
        streamed so only a handful of vregs stay live."""
        if unroll_classes:
            m = load(0)
            for c in range(1, num_classes):
                m = jnp.maximum(m, load(c))
            se = jnp.zeros_like(m)
            pk = jnp.zeros_like(m)
            for c in range(num_classes):
                xc = load(c)
                se = se + jnp.exp(xc - m)
                pk = pk + jnp.where(labels == c, xc, 0.0)
        else:
            m = lax.fori_loop(1, num_classes,
                              lambda c, m: jnp.maximum(m, load(c)),
                              load(0), unroll=4)

            def body(c, carry):
                se, pk = carry
                xc = load(c)
                return (se + jnp.exp(xc - m),
                        pk + jnp.where(labels == c, xc, 0.0))

            se, pk = lax.fori_loop(0, num_classes, body,
                                   (jnp.zeros_like(m), jnp.zeros_like(m)),
                                   unroll=4)
        return jnp.log(se) + m, pk

    def tile_stats(load, labels, rows, row_offset):
        lse, pk = class_reduce(load, labels)
        valid = labels != ignore_index
        if need_row_mask:
            row = (base_row + row_offset
                   + lax.broadcasted_iota(jnp.int32, (rows, _LANES), 0))
            valid = jnp.logical_and(valid, row < hwb)
        # keep jnp.where (select) so garbage rows cannot propagate NaN/Inf
        nll = jnp.where(valid, lse - pk, 0.0)
        return nll, valid.astype(jnp.float32)

    if ts % _SUBLANES == 0:
        groups = ts // _SUBLANES

        def group_body(g, carry):
            acc_s, acc_c = carry
            r0 = pl.multiple_of(g * _SUBLANES, _SUBLANES)
            labels = labels_ref[0, pl.ds(r0, _SUBLANES), :].astype(jnp.int32)
            load = lambda c: logits_ref[0, c, pl.ds(r0, _SUBLANES), :].astype(jnp.float32)
            nll, vcnt = tile_stats(load, labels, _SUBLANES, g * _SUBLANES)
            return acc_s + nll, acc_c + vcnt

        zero = jnp.zeros((_SUBLANES, _LANES), jnp.float32)
        acc_s, acc_c = lax.fori_loop(0, groups, group_body, (zero, zero),
                                     unroll=min(groups, 8))
        sum_ref[...] += acc_s
        cnt_ref[...] += acc_c
    else:
        # tiny full-extent tile (extent < 32 rows, not a multiple of 8): single pass
        labels = labels_ref[0].astype(jnp.int32)
        load = lambda c: logits_ref[0, c].astype(jnp.float32)
        nll, vcnt = tile_stats(load, labels, ts, 0)
        sum_ref[0:1, :] += jnp.sum(nll, axis=0, keepdims=True)
        cnt_ref[0:1, :] += jnp.sum(vcnt, axis=0, keepdims=True)


@functools.partial(jax.jit, static_argnames=("ignore_index", "block_bytes"))
def semantic_ce_loss(pred_nchw, gt_nhw, *, ignore_index=255, block_bytes=6 << 20):
    """CrossEntropyLoss(ignore_index), mean over non-ignored pixels."""
    n, c, h, w = pred_nchw.shape
    hw = h * w
    hwp = int(pl.cdiv(hw, _LANES)) * _LANES
    logits = pred_nchw.reshape(n, c, hw)
    labels = gt_nhw.reshape(n, hw)
    if labels.dtype != jnp.int32:
        labels = labels.astype(jnp.int32)
    if hwp != hw:  # rare: one pad copy only when H*W is not a multiple of 128
        logits = jnp.pad(logits, ((0, 0), (0, 0), (0, hwp - hw)))
        labels = jnp.pad(labels, ((0, 0), (0, hwp - hw)), constant_values=ignore_index)
    hwb = hwp // _LANES
    logits = logits.reshape(n, c, hwb, _LANES)
    labels = labels.reshape(n, hwb, _LANES)

    itemsize = jnp.dtype(logits.dtype).itemsize
    bytes_per_row = (c * itemsize + 4) * _LANES              # logits + int32 labels
    ts, num_tiles = _pick_row_tile(hwb, bytes_per_row, block_bytes)
    num_chunks = _pick_spatial_chunks(n, num_tiles)
    tpc = num_tiles // num_chunks
    need_row_mask = (num_chunks * tpc * ts) != hwb
    step_bytes = ts * bytes_per_row

    kernel = functools.partial(
        _semantic_ce_kernel, num_classes=c, ts=ts, hwb=hwb,
        ignore_index=ignore_index, tiles_per_chunk=tpc,
        need_row_mask=need_row_mask, unroll_classes=(c <= 16))

    out_rows = n * num_chunks * _SUBLANES
    s, cnt = pl.pallas_call(
        kernel,
        out_shape=(jax.ShapeDtypeStruct((out_rows, _LANES), jnp.float32),
                   jax.ShapeDtypeStruct((out_rows, _LANES), jnp.float32)),
        grid_spec=pltpu.PrefetchScalarGridSpec(
            num_scalar_prefetch=0,
            grid=(n, num_chunks, tpc),
            in_specs=[
                pl.BlockSpec((1, c, ts, _LANES),
                             lambda b, s, i: (b, 0, s * tpc + i, 0)),
                pl.BlockSpec((1, ts, _LANES),
                             lambda b, s, i: (b, s * tpc + i, 0)),
            ],
            out_specs=[
                pl.BlockSpec((_SUBLANES, _LANES),
                             lambda b, s, i: (b * num_chunks + s, 0)),
                pl.BlockSpec((_SUBLANES, _LANES),
                             lambda b, s, i: (b * num_chunks + s, 0)),
            ]),
        compiler_params=pltpu.CompilerParams(
            dimension_semantics=("parallel", "parallel", "arbitrary"),
            vmem_limit_bytes=_vmem_limit(step_bytes)),
    )(logits, labels)
    return jnp.sum(s) / jnp.sum(cnt)


# ------------------------------ masked depth L1 ---------------------------------
def _depth_l1_kernel(pred_ref, gt_ref, sum_ref, cnt_ref, *,
                     num_channels, ts, hwb, tiles_per_chunk, need_row_mask):
    s = pl.program_id(1)
    i = pl.program_id(2)

    @pl.when(i == 0)
    def _init():
        sum_ref[...] = jnp.zeros_like(sum_ref)
        cnt_ref[...] = jnp.zeros_like(cnt_ref)

    base_row = (s * tiles_per_chunk + i) * ts

    def tile_stats(loadp, loadg, rows, row_offset):
        g0 = loadg(0)
        gsum = g0
        adiff = jnp.abs(loadp(0) - g0)
        for c in range(1, num_channels):
            gc = loadg(c)
            gsum = gsum + gc
            adiff = adiff + jnp.abs(loadp(c) - gc)
        mask = gsum != 0
        if need_row_mask:
            row = (base_row + row_offset
                   + lax.broadcasted_iota(jnp.int32, (rows, _LANES), 0))
            mask = jnp.logical_and(mask, row < hwb)
        return jnp.where(mask, adiff, 0.0), mask.astype(jnp.float32)

    if ts % _SUBLANES == 0:
        groups = ts // _SUBLANES

        def group_body(g, carry):
            acc_s, acc_c = carry
            r0 = pl.multiple_of(g * _SUBLANES, _SUBLANES)
            loadp = lambda c: pred_ref[0, c, pl.ds(r0, _SUBLANES), :].astype(jnp.float32)
            loadg = lambda c: gt_ref[0, c, pl.ds(r0, _SUBLANES), :].astype(jnp.float32)
            a, m = tile_stats(loadp, loadg, _SUBLANES, g * _SUBLANES)
            return acc_s + a, acc_c + m

        zero = jnp.zeros((_SUBLANES, _LANES), jnp.float32)
        acc_s, acc_c = lax.fori_loop(0, groups, group_body, (zero, zero),
                                     unroll=min(groups, 8))
        sum_ref[...] += acc_s
        cnt_ref[...] += acc_c
    else:
        loadp = lambda c: pred_ref[0, c].astype(jnp.float32)
        loadg = lambda c: gt_ref[0, c].astype(jnp.float32)
        a, m = tile_stats(loadp, loadg, ts, 0)
        sum_ref[0:1, :] += jnp.sum(a, axis=0, keepdims=True)
        cnt_ref[0:1, :] += jnp.sum(m, axis=0, keepdims=True)


@functools.partial(jax.jit, static_argnames=("block_bytes",))
def depth_l1_loss(pred_nchw, gt_nchw, *, block_bytes=6 << 20):
    """sum(|pred - gt| * mask) / mask.sum(), mask = (sum_c gt != 0)."""
    n, c, h, w = pred_nchw.shape
    hw = h * w
    hwp = int(pl.cdiv(hw, _LANES)) * _LANES
    pred = pred_nchw.reshape(n, c, hw)
    gt = gt_nchw.reshape(n, c, hw)
    if hwp != hw:  # rare pad path (padded gt rows are 0 -> excluded by the mask)
        pred = jnp.pad(pred, ((0, 0), (0, 0), (0, hwp - hw)))
        gt = jnp.pad(gt, ((0, 0), (0, 0), (0, hwp - hw)))
    hwb = hwp // _LANES
    pred = pred.reshape(n, c, hwb, _LANES)
    gt = gt.reshape(n, c, hwb, _LANES)

    # size the tile from BOTH input streams so the double-buffered working set
    # stays inside the v7x VMEM budget even for small channel counts
    bytes_per_row = (jnp.dtype(pred.dtype).itemsize
                     + jnp.dtype(gt.dtype).itemsize) * c * _LANES
    ts, num_tiles = _pick_row_tile(hwb, bytes_per_row, block_bytes)
    num_chunks = _pick_spatial_chunks(n, num_tiles)
    tpc = num_tiles // num_chunks
    need_row_mask = (num_chunks * tpc * ts) != hwb
    step_bytes = ts * bytes_per_row

    kernel = functools.partial(
        _depth_l1_kernel, num_channels=c, ts=ts, hwb=hwb,
        tiles_per_chunk=tpc, need_row_mask=need_row_mask)

    out_rows = n * num_chunks * _SUBLANES
    s, cnt = pl.pallas_call(
        kernel,
        out_shape=(jax.ShapeDtypeStruct((out_rows, _LANES), jnp.float32),
                   jax.ShapeDtypeStruct((out_rows, _LANES), jnp.float32)),
        grid_spec=pltpu.PrefetchScalarGridSpec(
            num_scalar_prefetch=0,
            grid=(n, num_chunks, tpc),
            in_specs=[
                pl.BlockSpec((1, c, ts, _LANES),
                             lambda b, s, i: (b, 0, s * tpc + i, 0)),
                pl.BlockSpec((1, c, ts, _LANES),
                             lambda b, s, i: (b, 0, s * tpc + i, 0)),
            ],
            out_specs=[
                pl.BlockSpec((_SUBLANES, _LANES),
                             lambda b, s, i: (b * num_chunks + s, 0)),
                pl.BlockSpec((_SUBLANES, _LANES),
                             lambda b, s, i: (b * num_chunks + s, 0)),
            ]),
        compiler_params=pltpu.CompilerParams(
            dimension_semantics=("parallel", "parallel", "arbitrary"),
            vmem_limit_bytes=_vmem_limit(step_bytes)),
    )(pred, gt)
    return jnp.sum(s) / jnp.sum(cnt)


# --------------------------------- LossSum --------------------------------------
class LossSum:
    def __init__(self, tasks=('semantic', 'depth'), loss_weights=(1, 1)):
        self.tasks = list(tasks)
        self.loss_weights = list(loss_weights)

    def __call__(self, pred, gt):
        task_losses = {}
        for task in self.tasks:
            if task == 'semantic':
                task_losses[task] = semantic_ce_loss(pred[task], gt[task])
            elif task == 'depth':
                task_losses[task] = depth_l1_loss(pred[task], gt[task])
        loss = sum(self.loss_weights[i] * task_losses[t]
                   for i, t in enumerate(self.tasks))
        return loss, task_losses


# ------------------------------ pure-JAX reference -------------------------------
def _ref_losses(pred, gt, weights):
    logits = pred['semantic'].astype(jnp.float32)            # (N, C, H, W)
    labels = gt['semantic'].astype(jnp.int32)                # (N, H, W)
    lsm = jax.nn.log_softmax(logits, axis=1)
    valid = labels != 255
    safe = jnp.where(valid, labels, 0)
    picked = jnp.take_along_axis(lsm, safe[:, None, :, :], axis=1)[:, 0]
    sem = jnp.sum(jnp.where(valid, -picked, 0.0)) / jnp.sum(valid)
    dp, dg = pred['depth'].astype(jnp.float32), gt['depth'].astype(jnp.float32)
    mask = (jnp.sum(dg, axis=1) != 0).astype(jnp.float32)[:, None]
    dep = jnp.sum(jnp.abs(dp - dg) * mask) / jnp.sum(mask)
    return weights[0] * sem + weights[1] * dep, sem, dep


# ----------------------------------- tests ---------------------------------------
def _make_inputs(key, N, C, Cd, H, W):
    k1, k2, k3, k4, k5, k6 = jax.random.split(key, 6)
    sem_pred = jax.random.normal(k1, (N, C, H, W), dtype=jnp.float32)
    sem_gt = jax.random.randint(k2, (N, H, W), 0, C).astype(jnp.int32)
    sem_gt = jnp.where(jax.random.uniform(k3, (N, H, W)) < 0.1, 255, sem_gt)
    depth_pred = jax.random.normal(k4, (N, Cd, H, W), dtype=jnp.float32)
    depth_gt = jax.random.uniform(k5, (N, Cd, H, W), dtype=jnp.float32) + 0.1
    depth_gt = jnp.where(jax.random.uniform(k6, (N, 1, H, W)) < 0.2, 0.0, depth_gt)
    return ({'semantic': sem_pred, 'depth': depth_pred},
            {'semantic': sem_gt, 'depth': depth_gt})


def _check_case(key, N, C, Cd, H, W, sem_kwargs=None, dep_kwargs=None):
    pred, gt = _make_inputs(key, N, C, Cd, H, W)
    sem = semantic_ce_loss(pred['semantic'], gt['semantic'], **(sem_kwargs or {}))
    dep = depth_l1_loss(pred['depth'], gt['depth'], **(dep_kwargs or {}))
    jax.block_until_ready((sem, dep))
    _, ref_sem, ref_dep = _ref_losses(pred, gt, [1, 1])
    assert jnp.allclose(sem, ref_sem, rtol=1e-5, atol=1e-5), (sem, ref_sem)
    assert jnp.allclose(dep, ref_dep, rtol=1e-5, atol=1e-5), (dep, ref_dep)


if __name__ == "__main__":
    key = jax.random.PRNGKey(0)
    k_main, k_a, k_b, k_c = jax.random.split(key, 4)

    # primary case (module forward via the LossSum class)
    pred, gt = _make_inputs(k_main, N=2, C=8, Cd=1, H=16, W=16)
    model = LossSum(tasks=['semantic', 'depth'], loss_weights=[1, 1])
    loss, task_losses = model(pred, gt)
    loss = jax.block_until_ready(loss)

    ref_total, ref_sem, ref_dep = _ref_losses(pred, gt, [1, 1])
    assert jnp.allclose(task_losses['semantic'], ref_sem, rtol=1e-5, atol=1e-5)
    assert jnp.allclose(task_losses['depth'], ref_dep, rtol=1e-5, atol=1e-5)
    assert jnp.allclose(loss, ref_total, rtol=1e-5, atol=1e-5)

    # extra coverage: multi-tile grouped path with a row-masked (partial) last tile
    # (H*W/128 = 18 rows, forced ts = 8 -> 3 tiles, last one partially OOB)
    _check_case(k_a, N=2, C=8, Cd=1, H=48, W=48,
                sem_kwargs=dict(block_bytes=8 * (8 * 4 + 4) * _LANES),
                dep_kwargs=dict(block_bytes=8 * 2 * 4 * _LANES))

    # extra coverage: H*W not a multiple of 128 (lane-pad path), odd channel counts,
    # tiny full-extent tile fallback
    _check_case(k_b, N=1, C=5, Cd=2, H=20, W=20)

    # extra coverage: large class count (lax.fori_loop class path) and N=1 spatial
    # chunking (grid axis 1 = "parallel" for dual-TensorCore utilization)
    _check_case(k_c, N=1, C=40, Cd=1, H=64, W=64,
                sem_kwargs=dict(block_bytes=8 * (40 * 4 + 4) * _LANES),
                dep_kwargs=dict(block_bytes=8 * 2 * 4 * _LANES))

    print("KERNEL_OK")
</pallas_src>

<mosaic_0001>
module attributes {stable_mosaic.version = 11 : i64} {
  func.func @_semantic_ce_kernel(%arg0: i32, %arg1: i32, %arg2: i32, %arg3: memref<1x8x2x128xf32, #tpu.memory_space<vmem>>, %arg4: memref<1x2x128xi32, #tpu.memory_space<vmem>>, %arg5: memref<8x128xf32, #tpu.memory_space<vmem>>, %arg6: memref<8x128xf32, #tpu.memory_space<vmem>>) attributes {dimension_semantics = [#tpu.dimension_semantics<parallel>, #tpu.dimension_semantics<parallel>, #tpu.dimension_semantics<arbitrary>], iteration_bounds = array<i64: 2, 1, 1>, scalar_prefetch = 0 : i64, scratch_operands = 0 : i64, tpu.core_type = #tpu.core_type<tc>, window_params = [{transform_indices = @transform_0, window_bounds = array<i64: 1, 8, 2, 128>}, {transform_indices = @transform_1, window_bounds = array<i64: 1, 2, 128>}, {transform_indices = @transform_2, window_bounds = array<i64: 8, 128>}, {transform_indices = @transform_3, window_bounds = array<i64: 8, 128>}]} {
    %c0_i32 = arith.constant 0 : i32
    %0 = arith.cmpi eq, %arg2, %c0_i32 : i32
    %1 = arith.extui %0 : i1 to i32
    %c0_i32_0 = arith.constant 0 : i32
    %2 = arith.cmpi ne, %1, %c0_i32_0 : i32
    scf.if %2 {
      %cst_81 = arith.constant 0.000000e+00 : f32
      %129 = vector.broadcast %cst_81 : f32 to vector<8x128xf32>
      %c0_82 = arith.constant 0 : index
      %c0_83 = arith.constant 0 : index
      %130 = vector.load %arg5[%c0_82, %c0_83] : memref<8x128xf32, #tpu.memory_space<vmem>>, vector<8x128xf32>
      tpu.vector_store %arg5[%c0_82, %c0_83], %129 {strides = array<i32>} : memref<8x128xf32, #tpu.memory_space<vmem>>, vector<8x128xf32>,
      %cst_84 = arith.constant 0.000000e+00 : f32
      %131 = vector.broadcast %cst_84 : f32 to vector<8x128xf32>
      %c0_85 = arith.constant 0 : index
      %c0_86 = arith.constant 0 : index
      %132 = vector.load %arg6[%c0_85, %c0_86] : memref<8x128xf32, #tpu.memory_space<vmem>>, vector<8x128xf32>
      tpu.vector_store %arg6[%c0_85, %c0_86], %131 {strides = array<i32>} : memref<8x128xf32, #tpu.memory_space<vmem>>, vector<8x128xf32>,
    } else {
    }
    %c0 = arith.constant 0 : index
    %c0_1 = arith.constant 0 : index
    %c0_2 = arith.constant 0 : index
    %3 = vector.load %arg4[%c0, %c0_1, %c0_2] : memref<1x2x128xi32, #tpu.memory_space<vmem>>, vector<1x2x128xi32>
    %4 = vector.shape_cast %3 : vector<1x2x128xi32> to vector<2x128xi32>
    %c0_3 = arith.constant 0 : index
    %c0_4 = arith.constant 0 : index
    %c0_5 = arith.constant 0 : index
    %c0_6 = arith.constant 0 : index
    %5 = vector.load %arg3[%c0_3, %c0_4, %c0_5, %c0_6] : memref<1x8x2x128xf32, #tpu.memory_space<vmem>>, vector<1x1x2x128xf32>
    %6 = vector.shape_cast %5 : vector<1x1x2x128xf32> to vector<2x128xf32>
    %c0_7 = arith.constant 0 : index
    %c1 = arith.constant 1 : index
    %c0_8 = arith.constant 0 : index
    %c0_9 = arith.constant 0 : index
    %7 = vector.load %arg3[%c0_7, %c1, %c0_8, %c0_9] : memref<1x8x2x128xf32, #tpu.memory_space<vmem>>, vector<1x1x2x128xf32>
    %8 = vector.shape_cast %7 : vector<1x1x2x128xf32> to vector<2x128xf32>
    %9 = arith.maximumf %6, %8 : vector<2x128xf32>
    %c0_10 = arith.constant 0 : index
    %c2 = arith.constant 2 : index
    %c0_11 = arith.constant 0 : index
    %c0_12 = arith.constant 0 : index
    %10 = vector.load %arg3[%c0_10, %c2, %c0_11, %c0_12] : memref<1x8x2x128xf32, #tpu.memory_space<vmem>>, vector<1x1x2x128xf32>
    %11 = vector.shape_cast %10 : vector<1x1x2x128xf32> to vector<2x128xf32>
    %12 = arith.maximumf %9, %11 : vector<2x128xf32>
    %c0_13 = arith.constant 0 : index
    %c3 = arith.constant 3 : index
    %c0_14 = arith.constant 0 : index
    %c0_15 = arith.constant 0 : index
    %13 = vector.load %arg3[%c0_13, %c3, %c0_14, %c0_15] : memref<1x8x2x128xf32, #tpu.memory_space<vmem>>, vector<1x1x2x128xf32>
    %14 = vector.shape_cast %13 : vector<1x1x2x128xf32> to vector<2x128xf32>
    %15 = arith.maximumf %12, %14 : vector<2x128xf32>
    %c0_16 = arith.constant 0 : index
    %c4 = arith.constant 4 : index
    %c0_17 = arith.constant 0 : index
    %c0_18 = arith.constant 0 : index
    %16 = vector.load %arg3[%c0_16, %c4, %c0_17, %c0_18] : memref<1x8x2x128xf32, #tpu.memory_space<vmem>>, vector<1x1x2x128xf32>
    %17 = vector.shape_cast %16 : vector<1x1x2x128xf32> to vector<2x128xf32>
    %18 = arith.maximumf %15, %17 : vector<2x128xf32>
    %c0_19 = arith.constant 0 : index
    %c5 = arith.constant 5 : index
    %c0_20 = arith.constant 0 : index
    %c0_21 = arith.constant 0 : index
    %19 = vector.load %arg3[%c0_19, %c5, %c0_20, %c0_21] : memref<1x8x2x128xf32, #tpu.memory_space<vmem>>, vector<1x1x2x128xf32>
    %20 = vector.shape_cast %19 : vector<1x1x2x128xf32> to vector<2x128xf32>
    %21 = arith.maximumf %18, %20 : vector<2x128xf32>
    %c0_22 = arith.constant 0 : index
    %c6 = arith.constant 6 : index
    %c0_23 = arith.constant 0 : index
    %c0_24 = arith.constant 0 : index
    %22 = vector.load %arg3[%c0_22, %c6, %c0_23, %c0_24] : memref<1x8x2x128xf32, #tpu.memory_space<vmem>>, vector<1x1x2x128xf32>
    %23 = vector.shape_cast %22 : vector<1x1x2x128xf32> to vector<2x128xf32>
    %24 = arith.maximumf %21, %23 : vector<2x128xf32>
    %c0_25 = arith.constant 0 : index
    %c7 = arith.constant 7 : index
    %c0_26 = arith.constant 0 : index
    %c0_27 = arith.constant 0 : index
    %25 = vector.load %arg3[%c0_25, %c7, %c0_26, %c0_27] : memref<1x8x2x128xf32, #tpu.memory_space<vmem>>, vector<1x1x2x128xf32>
    %26 = vector.shape_cast %25 : vector<1x1x2x128xf32> to vector<2x128xf32>
    %27 = arith.maximumf %24, %26 : vector<2x128xf32>
    %cst = arith.constant 0.000000e+00 : f32
    %28 = vector.broadcast %cst : f32 to vector<2x128xf32>
    %cst_28 = arith.constant 0.000000e+00 : f32
    %29 = vector.broadcast %cst_28 : f32 to vector<2x128xf32>
    %c0_29 = arith.constant 0 : index
    %c0_30 = arith.constant 0 : index
    %c0_31 = arith.constant 0 : index
    %c0_32 = arith.constant 0 : index
    %30 = vector.load %arg3[%c0_29, %c0_30, %c0_31, %c0_32] : memref<1x8x2x128xf32, #tpu.memory_space<vmem>>, vector<1x1x2x128xf32>
    %31 = vector.shape_cast %30 : vector<1x1x2x128xf32> to vector<2x128xf32>
    %32 = arith.subf %31, %27 : vector<2x128xf32>
    %33 = math.exp %32 : vector<2x128xf32>
    %34 = arith.addf %28, %33 : vector<2x128xf32>
    %c0_i32_33 = arith.constant 0 : i32
    %35 = vector.broadcast %c0_i32_33 : i32 to vector<2x128xi32>
    %36 = arith.cmpi eq, %4, %35 : vector<2x128xi32>
    %cst_34 = arith.constant 0.000000e+00 : f32
    %37 = vector.broadcast %cst_34 : f32 to vector<2x128xf32>
    %38 = arith.select %36, %31, %37 : vector<2x128xi1>, vector<2x128xf32>
    %39 = arith.addf %29, %38 : vector<2x128xf32>
    %c0_35 = arith.constant 0 : index
    %c1_36 = arith.constant 1 : index
    %c0_37 = arith.constant 0 : index
    %c0_38 = arith.constant 0 : index
    %40 = vector.load %arg3[%c0_35, %c1_36, %c0_37, %c0_38] : memref<1x8x2x128xf32, #tpu.memory_space<vmem>>, vector<1x1x2x128xf32>
    %41 = vector.shape_cast %40 : vector<1x1x2x128xf32> to vector<2x128xf32>
    %42 = arith.subf %41, %27 : vector<2x128xf32>
    %43 = math.exp %42 : vector<2x128xf32>
    %44 = arith.addf %34, %43 : vector<2x128xf32>
    %c1_i32 = arith.constant 1 : i32
    %45 = vector.broadcast %c1_i32 : i32 to vector<2x128xi32>
    %46 = arith.cmpi eq, %4, %45 : vector<2x128xi32>
    %cst_39 = arith.constant 0.000000e+00 : f32
    %47 = vector.broadcast %cst_39 : f32 to vector<2x128xf32>
    %48 = arith.select %46, %41, %47 : vector<2x128xi1>, vector<2x128xf32>
    %49 = arith.addf %39, %48 : vector<2x128xf32>
    %c0_40 = arith.constant 0 : index
    %c2_41 = arith.constant 2 : index
    %c0_42 = arith.constant 0 : index
    %c0_43 = arith.constant 0 : index
    %50 = vector.load %arg3[%c0_40, %c2_41, %c0_42, %c0_43] : memref<1x8x2x128xf32, #tpu.memory_space<vmem>>, vector<1x1x2x128xf32>
    %51 = vector.shape_cast %50 : vector<1x1x2x128xf32> to vector<2x128xf32>
    %52 = arith.subf %51, %27 : vector<2x128xf32>
    %53 = math.exp %52 : vector<2x128xf32>
    %54 = arith.addf %44, %53 : vector<2x128xf32>
    %c2_i32 = arith.constant 2 : i32
    %55 = vector.broadcast %c2_i32 : i32 to vector<2x128xi32>
    %56 = arith.cmpi eq, %4, %55 : vector<2x128xi32>
    %cst_44 = arith.constant 0.000000e+00 : f32
    %57 = vector.broadcast %cst_44 : f32 to vector<2x128xf32>
    %58 = arith.select %56, %51, %57 : vector<2x128xi1>, vector<2x128xf32>
    %59 = arith.addf %49, %58 : vector<2x128xf32>
    %c0_45 = arith.constant 0 : index
    %c3_46 = arith.constant 3 : index
    %c0_47 = arith.constant 0 : index
    %c0_48 = arith.constant 0 : index
    %60 = vector.load %arg3[%c0_45, %c3_46, %c0_47, %c0_48] : memref<1x8x2x128xf32, #tpu.memory_space<vmem>>, vector<1x1x2x128xf32>
    %61 = vector.shape_cast %60 : vector<1x1x2x128xf32> to vector<2x128xf32>
    %62 = arith.subf %61, %27 : vector<2x128xf32>
    %63 = math.exp %62 : vector<2x128xf32>
    %64 = arith.addf %54, %63 : vector<2x128xf32>
    %c3_i32 = arith.constant 3 : i32
    %65 = vector.broadcast %c3_i32 : i32 to vector<2x128xi32>
    %66 = arith.cmpi eq, %4, %65 : vector<2x128xi32>
    %cst_49 = arith.constant 0.000000e+00 : f32
    %67 = vector.broadcast %cst_49 : f32 to vector<2x128xf32>
    %68 = arith.select %66, %61, %67 : vector<2x128xi1>, vector<2x128xf32>
    %69 = arith.addf %59, %68 : vector<2x128xf32>
    %c0_50 = arith.constant 0 : index
    %c4_51 = arith.constant 4 : index
    %c0_52 = arith.constant 0 : index
    %c0_53 = arith.constant 0 : index
    %70 = vector.load %arg3[%c0_50, %c4_51, %c0_52, %c0_53] : memref<1x8x2x128xf32, #tpu.memory_space<vmem>>, vector<1x1x2x128xf32>
    %71 = vector.shape_cast %70 : vector<1x1x2x128xf32> to vector<2x128xf32>
    %72 = arith.subf %71, %27 : vector<2x128xf32>
    %73 = math.exp %72 : vector<2x128xf32>
    %74 = arith.addf %64, %73 : vector<2x128xf32>
    %c4_i32 = arith.constant 4 : i32
    %75 = vector.broadcast %c4_i32 : i32 to vector<2x128xi32>
    %76 = arith.cmpi eq, %4, %75 : vector<2x128xi32>
    %cst_54 = arith.constant 0.000000e+00 : f32
    %77 = vector.broadcast %cst_54 : f32 to vector<2x128xf32>
    %78 = arith.select %76, %71, %77 : vector<2x128xi1>, vector<2x128xf32>
    %79 = arith.addf %69, %78 : vector<2x128xf32>
    %c0_55 = arith.constant 0 : index
    %c5_56 = arith.constant 5 : index
    %c0_57 = arith.constant 0 : index
    %c0_58 = arith.constant 0 : index
    %80 = vector.load %arg3[%c0_55, %c5_56, %c0_57, %c0_58] : memref<1x8x2x128xf32, #tpu.memory_space<vmem>>, vector<1x1x2x128xf32>
    %81 = vector.shape_cast %80 : vector<1x1x2x128xf32> to vector<2x128xf32>
    %82 = arith.subf %81, %27 : vector<2x128xf32>
    %83 = math.exp %82 : vector<2x128xf32>
    %84 = arith.addf %74, %83 : vector<2x128xf32>
    %c5_i32 = arith.constant 5 : i32
    %85 = vector.broadcast %c5_i32 : i32 to vector<2x128xi32>
    %86 = arith.cmpi eq, %4, %85 : vector<2x128xi32>
    %cst_59 = arith.constant 0.000000e+00 : f32
    %87 = vector.broadcast %cst_59 : f32 to vector<2x128xf32>
    %88 = arith.select %86, %81, %87 : vector<2x128xi1>, vector<2x128xf32>
    %89 = arith.addf %79, %88 : vector<2x128xf32>
    %c0_60 = arith.constant 0 : index
    %c6_61 = arith.constant 6 : index
    %c0_62 = arith.constant 0 : index
    %c0_63 = arith.constant 0 : index
    %90 = vector.load %arg3[%c0_60, %c6_61, %c0_62, %c0_63] : memref<1x8x2x128xf32, #tpu.memory_space<vmem>>, vector<1x1x2x128xf32>
    %91 = vector.shape_cast %90 : vector<1x1x2x128xf32> to vector<2x128xf32>
    %92 = arith.subf %91, %27 : vector<2x128xf32>
    %93 = math.exp %92 : vector<2x128xf32>
    %94 = arith.addf %84, %93 : vector<2x128xf32>
    %c6_i32 = arith.constant 6 : i32
    %95 = vector.broadcast %c6_i32 : i32 to vector<2x128xi32>
    %96 = arith.cmpi eq, %4, %95 : vector<2x128xi32>
    %cst_64 = arith.constant 0.000000e+00 : f32
    %97 = vector.broadcast %cst_64 : f32 to vector<2x128xf32>
    %98 = arith.select %96, %91, %97 : vector<2x128xi1>, vector<2x128xf32>
    %99 = arith.addf %89, %98 : vector<2x128xf32>
    %c0_65 = arith.constant 0 : index
    %c7_66 = arith.constant 7 : index
    %c0_67 = arith.constant 0 : index
    %c0_68 = arith.constant 0 : index
    %100 = vector.load %arg3[%c0_65, %c7_66, %c0_67, %c0_68] : memref<1x8x2x128xf32, #tpu.memory_space<vmem>>, vector<1x1x2x128xf32>
    %101 = vector.shape_cast %100 : vector<1x1x2x128xf32> to vector<2x128xf32>
    %102 = arith.subf %101, %27 : vector<2x128xf32>
    %103 = math.exp %102 : vector<2x128xf32>
    %104 = arith.addf %94, %103 : vector<2x128xf32>
    %c7_i32 = arith.constant 7 : i32
    %105 = vector.broadcast %c7_i32 : i32 to vector<2x128xi32>
    %106 = arith.cmpi eq, %4, %105 : vector<2x128xi32>
    %cst_69 = arith.constant 0.000000e+00 : f32
    %107 = vector.broadcast %cst_69 : f32 to vector<2x128xf32>
    %108 = arith.select %106, %101, %107 : vector<2x128xi1>, vector<2x128xf32>
    %109 = arith.addf %99, %108 : vector<2x128xf32>
    %110 = math.log %104 : vector<2x128xf32>
    %111 = arith.addf %110, %27 : vector<2x128xf32>
    %c255_i32 = arith.constant 255 : i32
    %112 = vector.broadcast %c255_i32 : i32 to vector<2x128xi32>
    %113 = arith.cmpi ne, %4, %112 : vector<2x128xi32>
    %114 = arith.subf %111, %109 : vector<2x128xf32>
    %cst_70 = arith.constant 0.000000e+00 : f32
    %115 = vector.broadcast %cst_70 : f32 to vector<2x128xf32>
    %116 = arith.select %113, %114, %115 : vector<2x128xi1>, vector<2x128xf32>
    %117 = arith.extui %113 : vector<2x128xi1> to vector<2x128xi32>
    %118 = arith.sitofp %117 : vector<2x128xi32> to vector<2x128xf32>
    %c0_71 = arith.constant 0 : index
    %c0_72 = arith.constant 0 : index
    %119 = vector.load %arg5[%c0_71, %c0_72] : memref<8x128xf32, #tpu.memory_space<vmem>>, vector<1x128xf32>
    %cst_73 = arith.constant dense<0.000000e+00> : vector<128xf32>
    %120 = vector.multi_reduction <add>, %116, %cst_73 [0] : vector<2x128xf32> to vector<128xf32>
    %121 = vector.shape_cast %120 : vector<128xf32> to vector<1x128xf32>
    %122 = arith.addf %119, %121 : vector<1x128xf32>
    %c0_74 = arith.constant 0 : index
    %c0_75 = arith.constant 0 : index
    %123 = vector.load %arg5[%c0_74, %c0_75] : memref<8x128xf32, #tpu.memory_space<vmem>>, vector<1x128xf32>
    tpu.vector_store %arg5[%c0_74, %c0_75], %122 {strides = array<i32>} : memref<8x128xf32, #tpu.memory_space<vmem>>, vector<1x128xf32>,
    %c0_76 = arith.constant 0 : index
    %c0_77 = arith.constant 0 : index
    %124 = vector.load %arg6[%c0_76, %c0_77] : memref<8x128xf32, #tpu.memory_space<vmem>>, vector<1x128xf32>
    %cst_78 = arith.constant dense<0.000000e+00> : vector<128xf32>
    %125 = vector.multi_reduction <add>, %118, %cst_78 [0] : vector<2x128xf32> to vector<128xf32>
    %126 = vector.shape_cast %125 : vector<128xf32> to vector<1x128xf32>
    %127 = arith.addf %124, %126 : vector<1x128xf32>
    %c0_79 = arith.constant 0 : index
    %c0_80 = arith.constant 0 : index
    %128 = vector.load %arg6[%c0_79, %c0_80] : memref<8x128xf32, #tpu.memory_space<vmem>>, vector<1x128xf32>
    tpu.vector_store %arg6[%c0_79, %c0_80], %127 {strides = array<i32>} : memref<8x128xf32, #tpu.memory_space<vmem>>, vector<1x128xf32>,
    return
  }
  func.func @transform_0(%arg0: i32, %arg1: i32, %arg2: i32) -> (i32, i32, i32, i32) {
    %c1_i32 = arith.constant 1 : i32
    %0 = arith.muli %arg1, %c1_i32 : i32
    %1 = arith.addi %0, %arg2 : i32
    %c0_i32 = arith.constant 0 : i32
    %c0_i32_0 = arith.constant 0 : i32
    %c0_i32_1 = arith.constant 0 : i32
    return %arg0, %c0_i32, %1, %c0_i32_0 : i32, i32, i32, i32
  }
  func.func @transform_1(%arg0: i32, %arg1: i32, %arg2: i32) -> (i32, i32, i32) {
    %c1_i32 = arith.constant 1 : i32
    %0 = arith.muli %arg1, %c1_i32 : i32
    %1 = arith.addi %0, %arg2 : i32
    %c0_i32 = arith.constant 0 : i32
    %c0_i32_0 = arith.constant 0 : i32
    return %arg0, %1, %c0_i32 : i32, i32, i32
  }
  func.func @transform_2(%arg0: i32, %arg1: i32, %arg2: i32) -> (i32, i32) {
    %c1_i32 = arith.constant 1 : i32
    %0 = arith.muli %arg0, %c1_i32 : i32
    %1 = arith.addi %0, %arg1 : i32
    %c0_i32 = arith.constant 0 : i32
    %c0_i32_0 = arith.constant 0 : i32
    return %1, %c0_i32 : i32, i32
  }
  func.func @transform_3(%arg0: i32, %arg1: i32, %arg2: i32) -> (i32, i32) {
    %c1_i32 = arith.constant 1 : i32
    %0 = arith.muli %arg0, %c1_i32 : i32
    %1 = arith.addi %0, %arg1 : i32
    %c0_i32 = arith.constant 0 : i32
    %c0_i32_0 = arith.constant 0 : i32
    return %1, %c0_i32 : i32, i32
  }
}

</mosaic_0001>

<bundles_post_ra>
// kernel: semantic_ce_loss.1
= control target key start
LH: loop header
LB: loop body
LE: loop exit
PB: predicated region body
PF: predicated region fallthrough
CT: control target
= control target key end

     0   :  { %s608_s12 = smov 0   ;;  %s610_s13 = smov 0   ;;  %s707_s0 = inlined_call_operand.vmem [shape: f32[2,8,2,128], index: 0, kind: input, shape index: {}]   ;;  %s708_s1 = inlined_call_operand.vmem [shape: s32[2,2,128], index: 1, kind: input, shape index: {}]   ;;  %s709_s2 = inlined_call_operand.vmem [shape: f32[16,128], index: 2, kind: output, shape index: {0}]   ;;  %s710_s3 = inlined_call_operand.vmem [shape: f32[16,128], index: 3, kind: output, shape index: {1}]  }
   0x1   :  { %s612_s14 = smov 0  }
   0x2 LB: > { %s33_s15 = sadd.s32 1, %s581_s13  ;;  %p503_p0 = scmp.ge.s32.totalorder %s585_s14, 1  ;;  %s585_s14 = sphi %s612_s14, %s14_s14   ;;  %s581_s13 = sphi %s610_s13, %s712_s13   ;;  %s577_s12 = sphi %s608_s12, %s711_s12  }
   0x3   : > { %p35_p1 = scmp.ge.s32.totalorder %s33_s15, 2  ;;  %p190_p2 = scmp.lt.s32.totalorder %s585_s14, 3 }
   0x5   : > { %s714_s15 = smov (%p35_p1, %s33_s15), 0  ;;  %p191_p3 = pnand %p503_p0, %p190_p2 }
   0x6   : > { %p232_p4 = scmp.lt.s32.totalorder (!%p191_p3), %s577_s12, 1 }
   0x7   : > { %194 = sbr.rel (%p191_p3) target bundleno = 86 (0x56), region = 28 }
   0xc   : > { %s716_s12 = smov (!%p232_p4, %s577_s12), 1  ;;  %v587_v3 = vmov 0.0   ;;  %vm356_vm4 = vcmask 1041408  }
   0xd   : > { %s519_s16 = sshll.u32 %s716_s12, 4  ;;  %s507_s20 = sshll.u32 %s716_s12, 3 }
   0xe   : > { %s239_s19 = scalar_lea.vmem %s707_s0, %s519_s16  ;;  %s632_s23 = scalar_lea.vmem %s709_s2, %s507_s20 }
   0xf   : > { %v269_v0 = vld [vmem:[%s239_s19] sm:$0x3]  ;;  %v509_v1 = vld [vmem:[%s239_s19 + $0x2] sm:$0x3]  ;;  %v510_v2 = vld [vmem:[%s239_s19 + $0x4] sm:$0x3]  ;;  %s637_s26 = scalar_lea.vmem %s710_s3, %s507_s20  ;;  %266 = vst [vmem:[%s632_s23] sm:$0xff] %v587_v3 }
  0x10   : > { %v272_v4 = vmax.f32 %v269_v0, %v509_v1  ;;  %v511_v5 = vld [vmem:[%s239_s19 + $0x6] sm:$0x3]  ;;  %267 = vst [vmem:[%s637_s26] sm:$0xff] %v587_v3  ;;  %v641_v7 = vld [vmem:[%s239_s19 + $0x8] sm:$0x3]  ;;  %v643_v9 = vld [vmem:[%s239_s19 + $0xa] sm:$0x3] }
  0x11   : > { %v646_v11 = vld [vmem:[%s239_s19 + $0xc] sm:$0x3]  ;;  %s506_s27 = sshll.u32 %s716_s12, 1  ;;  %v649_v13 = vld [vmem:[%s239_s19 + $0xe] sm:$0x3] }
  0x12   : > { %v275_v6 = vmax.f32 %v272_v4, %v510_v2  ;;  %s248_s30 = scalar_lea.vmem %s708_s1, %s506_s27 }
  0x13   : > { %v658_v16 = vld [vmem:[%s248_s30] sm:$0x3] }
  0x14   : > { %v278_v8 = vmax.f32 %v275_v6, %v511_v5  ;;  %vm295_vm0 = vcmp.eq.s32.totalorder %v658_v16, 0  ;;  %vm302_vm1 = vcmp.eq.s32.totalorder %v658_v16, 1  ;;  %vm350_vm2 = vcmp.ne.s32.totalorder %v658_v16, 255 }
  0x15   : > { %vm309_vm3 = vcmp.eq.s32.totalorder %v658_v16, 2  ;;  %v296_v29 = vsel %vm295_vm0, %v269_v0, 0.0  ;;  %v303_v30 = vsel %vm302_vm1, %v509_v1, 0.0  ;;  %v516_v33 = vsel %vm350_vm2, 1.0, %v587_v3 }
  0x16   : > { %v281_v10 = vmax.f32 %v278_v8, %v641_v7  ;;  %v367_v34 = vsel %vm356_vm4, %v516_v33, 0.0  ;;  %v304_v35 = vadd.f32 %v303_v30, %v296_v29  ;;  %v310_v39 = vsel %vm309_vm3, %v510_v2, 0.0 }
  0x17   : > { %v368_v37 = vrot.slane %v367_v34, 4  ;;  %vm316_vm5 = vcmp.eq.s32.totalorder %v658_v16, 3  ;;  %vm323_vm6 = vcmp.eq.s32.totalorder %v658_v16, 4  ;;  %vm330_vm7 = vcmp.eq.s32.totalorder %v658_v16, 5  ;;  %v366_v61 = vld [vmem:[%s637_s26] sm:$0x1] }
  0x18   : > { %v284_v12 = vmax.f32 %v281_v10, %v643_v9  ;;  %v311_v46 = vadd.f32 %v310_v39, %v304_v35  ;;  %v317_v49 = vsel %vm316_vm5, %v511_v5, 0.0  ;;  %v324_v57 = vsel %vm323_vm6, %v641_v7, 0.0 }
  0x19   : > { %v369_v42 = vadd.f32 %v368_v37, %v367_v34  ;;  %vm337_vm8 = vcmp.eq.s32.totalorder %v658_v16, 6  ;;  %vm344_vm9 = vcmp.eq.s32.totalorder %v658_v16, 7 }
  0x1a   : > { %v287_v14 = vmax.f32 %v284_v12, %v646_v11  ;;  %v318_v54 = vadd.f32 %v317_v49, %v311_v46 }
  0x1b   : > { %v370_v47 = vrot.slane %v369_v42, 2 }
  0x1c   : > { %v656_v15 = vmax.f32 %v287_v14, %v649_v13  ;;  %v325_v63 = vadd.f32 %v324_v57, %v318_v54 }
  0x1d   : > { %v371_v51 = vadd.f32 %v370_v47, %v369_v42 }
  0x1e   : > { %v291_v17 = vsub.f32 %v269_v0, %v656_v15  ;;  %v298_v18 = vsub.f32 %v509_v1, %v656_v15  ;;  %v305_v19 = vsub.f32 %v510_v2, %v656_v15  ;;  %v312_v20 = vsub.f32 %v511_v5, %v656_v15 }
  0x1f   : > { %v319_v21 = vsub.f32 %v641_v7, %v656_v15  ;;  %v326_v26 = vsub.f32 %v643_v9, %v656_v15  ;;  %v333_v28 = vsub.f32 %v646_v11, %v656_v15  ;;  %v340_v31 = vsub.f32 %v649_v13, %v656_v15 }
  0x20   : > { %v292_v22 = vmul.f32 1.442695, %v291_v17  ;;  %v299_v23 = vmul.f32 1.442695, %v298_v18  ;;  %v306_v24 = vmul.f32 1.442695, %v305_v19 }
  0x21   : > { %v313_v25 = vmul.f32 1.442695, %v312_v20  ;;  %v320_v27 = vmul.f32 1.442695, %v319_v21  ;;  %v327_v32 = vmul.f32 1.442695, %v326_v26 }
  0x22   : > { %545 = vpow2.f32 %v292_v22  ;;  %v334_v36 = vmul.f32 1.442695, %v333_v28  ;;  %v341_v41 = vmul.f32 1.442695, %v340_v31  ;;  %v372_v55 = vrot.slane %v371_v51, 1 }
  0x23   : > { %547 = vpow2.f32 %v299_v23  ;;  %v331_v1 = vsel %vm330_vm7, %v643_v9, 0.0  ;;  %v338_v5 = vsel %vm337_vm8, %v646_v11, 0.0  ;;  %v345_v7 = vsel %vm344_vm9, %v649_v13, 0.0  ;;  %v355_v23 = vld [vmem:[%s632_s23] sm:$0x1] }
  0x24   : > { %549 = vpow2.f32 %v306_v24  ;;  %v373_v59 = vadd.f32 %v372_v55, %v371_v51  ;;  %v332_v4 = vadd.f32 %v331_v1, %v325_v63 }
  0x25   : > { %551 = vpow2.f32 %v313_v25 }
  0x26   : > { %553 = vpow2.f32 %v320_v27  ;;  %v374_v0 = vadd.f32 %v373_v59, %v366_v61  ;;  %v339_v6 = vadd.f32 %v338_v5, %v332_v4 }
  0x27   : > { %555 = vpow2.f32 %v327_v32 }
  0x28   : > { %v546_v38 = vpop.eup %545  ;;  %557 = vpow2.f32 %v334_v36  ;;  %375 = vst [vmem:[%s637_s26] sm:$0x1] %v374_v0  ;;  %v346_v10 = vadd.f32 %v345_v7, %v339_v6 }
  0x29   : > { %v548_v40 = vpop.eup %547  ;;  %559 = vpow2.f32 %v341_v41 }
  0x2a   : > { %v550_v43 = vpop.eup %549  ;;  %v301_v44 = vadd.f32 %v548_v40, %v546_v38 }
  0x2b   : > { %v552_v45 = vpop.eup %551 }
  0x2c   : > { %v308_v48 = vadd.f32 %v550_v43, %v301_v44  ;;  %v554_v50 = vpop.eup %553 }
  0x2d   : > { %v556_v53 = vpop.eup %555 }
  0x2e   : > { %v315_v52 = vadd.f32 %v552_v45, %v308_v48  ;;  %v558_v58 = vpop.eup %557 }
  0x2f   : > { %v560_v62 = vpop.eup %559 }
  0x30   : > { %v322_v56 = vadd.f32 %v554_v50, %v315_v52 }
  0x32   : > { %v329_v60 = vadd.f32 %v556_v53, %v322_v56 }
  0x34   : > { %v336_v2 = vadd.f32 %v558_v58, %v329_v60 }
  0x36   : > { %v343_v3 = vadd.f32 %v560_v62, %v336_v2 }
  0x38   : > { %561 = vlog2.f32 %v343_v3 }
  0x3e   : > { %v562_v8 = vpop.eup %561 }
  0x3f   : > { %v348_v12 = vmul.f32 0.6931472, %v562_v8 }
  0x41   : > { %v349_v9 = vadd.f32 %v348_v12, %v656_v15 }
  0x43   : > { %v351_v14 = vsub.f32 %v349_v9, %v346_v10 }
  0x45   : > { %v352_v17 = vsel %vm350_vm2, %v351_v14, 0.0 }
  0x46   : > { %v357_v18 = vsel %vm356_vm4, %v352_v17, 0.0 }
  0x47   : > { %v358_v11 = vrot.slane %v357_v18, 4 }
  0x49   : > { %v359_v19 = vadd.f32 %v358_v11, %v357_v18 }
  0x4b   : > { %v360_v20 = vrot.slane %v359_v19, 2 }
  0x4d   : > { %v361_v21 = vadd.f32 %v360_v20, %v359_v19 }
  0x4f   : > { %v362_v22 = vrot.slane %v361_v21, 1 }
  0x51   : > { %v363_v24 = vadd.f32 %v362_v22, %v361_v21 }
  0x53   : > { %v364_v13 = vadd.f32 %v363_v24, %v355_v23 }
  0x55   : > { %365 = vst [vmem:[%s632_s23] sm:$0x1] %v364_v13 }
  0x56 PF: > { %s14_s14 = sadd.s32 1, %s585_s14   ;;  %s711_s12 = smov %s581_s13 }
  0x57   : > { %p11_p5 = scmp.ge.s32.totalorder %s14_s14, 4   ;;  %s712_s13 = smov %s714_s15 }
  0x59   :  { %13 = sbr.rel (!%p11_p5) target bundleno = 2 (0x2), region = 84 }

</bundles_post_ra>
